<compile_context>
chip_gen: v7x
topology: tpu7x:2x2x1
jax: 0.10.0
libtpu: 0.0.40
codegen_flags: <defaults>
</compile_context>

<pallas_src>
import jax
import jax.numpy as jnp
from jax.experimental import pallas as pl
from jax.experimental.pallas import tpu as pltpu


def _round_up(x, m):
    return ((x + m - 1) // m) * m


# ---------------------------------------------------------------------------
# Kernel
# ---------------------------------------------------------------------------
def _make_kernel(S, A, H, off):
    """Returns the fused MLP kernel. S/A/H and segment offsets are static."""

    def kernel(state_ref, action_ref, params_ref, out_ref):
        # Static views into the single packed parameter buffer (one DMA).
        w1s = params_ref[off["w1s"]:off["w1s"] + S, :]          # [S, H]
        w1a = params_ref[off["w1a"]:off["w1a"] + A, :]          # [A, H]
        w2  = params_ref[off["w2"]:off["w2"] + H, :]            # [H, H]
        wf  = params_ref[off["wf"]:off["wf"] + 1, :]            # [1, H]  (Wpsi@Wr)^T
        b1  = params_ref[off["b1"]:off["b1"] + 1, :]            # [1, H]
        b2  = params_ref[off["b2"]:off["b2"] + 1, :]            # [1, H]
        bf  = params_ref[off["bf"]:off["bf"] + 1, 0:1]          # [1, 1]  bpsi@Wr + br

        # feat_l1: relu(state @ W1_s + action @ W1_a + b1)   (concat avoided)
        h = jnp.dot(state_ref[...], w1s, preferred_element_type=jnp.float32)
        h = h + jnp.dot(action_ref[...], w1a, preferred_element_type=jnp.float32)
        h = jnp.maximum(h + b1, 0.0)

        # hidden_l1: relu(h @ W2 + b2)
        h = jnp.dot(h, w2, preferred_element_type=jnp.float32)
        h = jnp.maximum(h + b2, 0.0)

        # fused psi_l1 o r_l1, computed lane-dense: q_row[0, b] = sum_h h[b,h]*wf[h]
        q = jax.lax.dot_general(
            wf, h, (((1,), (1,)), ((), ())),
            preferred_element_type=jnp.float32)                 # [1, TB]
        out_ref[...] = (q + bf).astype(out_ref.dtype)

    return kernel


# ---------------------------------------------------------------------------
# Wrapper
# ---------------------------------------------------------------------------
def shared_sf_forward(state, action, packed):
    """q = r_l1(psi_l1(relu(hidden_l1(relu(feat_l1([state, action]))))))."""
    S, A, H = packed["S"], packed["A"], packed["H"]
    off, buf = packed["off"], packed["buf"]
    B = state.shape[0]

    # Batch tile: multiple of 8, capped at 128; pad batch to a tile multiple.
    TB = min(_round_up(B, 8), 128)
    B_pad = _round_up(B, TB)
    if B_pad != B:
        state = jnp.pad(state, ((0, B_pad - B), (0, 0)))
        action = jnp.pad(action, ((0, B_pad - B), (0, 0)))

    P = buf.shape[0]
    grid = (B_pad // TB,)

    flops = 2 * B_pad * (S * H + A * H + H * H + H)
    bytes_accessed = 4 * (B_pad * (S + A) + P * H + B_pad)

    q_row = pl.pallas_call(
        _make_kernel(S, A, H, off),
        out_shape=jax.ShapeDtypeStruct((1, B_pad), jnp.float32),
        grid=grid,
        in_specs=[
            pl.BlockSpec((TB, S), lambda i: (i, 0)),
            pl.BlockSpec((TB, A), lambda i: (i, 0)),
            pl.BlockSpec((P, H), lambda i: (0, 0)),   # weights stay VMEM-resident
        ],
        out_specs=pl.BlockSpec((1, TB), lambda i: (0, i)),
        compiler_params=pltpu.CompilerParams(
            dimension_semantics=("parallel",)),
        cost_estimate=pl.CostEstimate(
            flops=flops, transcendentals=0, bytes_accessed=bytes_accessed),
    )(state, action, buf)

    return q_row[0, :B][:, None]                                 # [B, 1]


# ---------------------------------------------------------------------------
# Parameter construction / packing
# ---------------------------------------------------------------------------
def _xavier_uniform(key, fan_in, fan_out):
    bound = (6.0 / (fan_in + fan_out)) ** 0.5
    # stored as [in, out] (transposed vs. PyTorch's [out, in])
    return jax.random.uniform(key, (fan_in, fan_out), jnp.float32, -bound, bound)


def make_params(key, state_dim, action_dim, feat_dim, hidden_dim):
    k1, k2, k3, k4 = jax.random.split(key, 4)
    in_dim = state_dim + action_dim
    return {
        "w1":   _xavier_uniform(k1, in_dim, hidden_dim),
        "b1":   jnp.zeros((1, hidden_dim), jnp.float32),
        "w2":   _xavier_uniform(k2, hidden_dim, hidden_dim),
        "b2":   jnp.zeros((1, hidden_dim), jnp.float32),
        "wpsi": _xavier_uniform(k3, hidden_dim, feat_dim),
        "bpsi": jnp.zeros((1, feat_dim), jnp.float32),
        "wr":   _xavier_uniform(k4, feat_dim, 1),
        "br":   jnp.zeros((1, 1), jnp.float32),
    }


def pack_params(p, state_dim, action_dim):
    """Fuse psi_l1∘r_l1 and pack all weights/biases into one [P, H] buffer."""
    S, A = state_dim, action_dim
    H = p["w1"].shape[1]

    w1s = p["w1"][:S, :]                       # [S, H]
    w1a = p["w1"][S:, :]                       # [A, H]
    w2 = p["w2"]                               # [H, H]
    wf = (p["wpsi"] @ p["wr"]).T               # [1, H]   fused weight
    bf = p["bpsi"] @ p["wr"] + p["br"]         # [1, 1]   fused bias
    bf_row = jnp.pad(bf, ((0, 0), (0, H - 1)))  # [1, H]

    rows, off, cursor = [], {}, 0

    def add(name, mat):
        nonlocal cursor
        off[name] = cursor
        r = mat.shape[0]
        r_pad = _round_up(r, 8)                # 8-sublane aligned segment starts
        rows.append(jnp.pad(mat, ((0, r_pad - r), (0, 0))))
        cursor += r_pad

    add("w1s", w1s)
    add("w1a", w1a)
    add("w2", w2)
    add("wf", wf)
    add("b1", p["b1"])
    add("b2", p["b2"])
    add("bf", bf_row)

    buf = jnp.concatenate(rows, axis=0).astype(jnp.float32)
    return {"buf": buf, "off": off, "S": S, "A": A, "H": H}


# ---------------------------------------------------------------------------
# Reference (unfused, matches PyTorch op order)
# ---------------------------------------------------------------------------
def reference_forward(state, action, p):
    x = jnp.concatenate([state, action], axis=1)
    h = jnp.maximum(x @ p["w1"] + p["b1"], 0.0)
    h = jnp.maximum(h @ p["w2"] + p["b2"], 0.0)
    psi = h @ p["wpsi"] + p["bpsi"]
    return psi @ p["wr"] + p["br"]


if __name__ == "__main__":
    state_dim, action_dim, feat_dim, hidden_dim = 12, 4, 16, 32

    key = jax.random.PRNGKey(0)
    kp, ks, ka = jax.random.split(key, 3)
    params = make_params(kp, state_dim, action_dim, feat_dim, hidden_dim)
    packed = pack_params(params, state_dim, action_dim)

    # batch=8 hits the unpadded path; batch=5 exercises the batch-padding path.
    for batch in (8, 5):
        kb = jax.random.fold_in(ks, batch)
        ks_b, ka_b = jax.random.split(kb)
        state = jax.random.normal(ks_b, (batch, state_dim), jnp.float32)
        action = jax.random.normal(ka_b, (batch, action_dim), jnp.float32)

        out = jax.block_until_ready(shared_sf_forward(state, action, packed))
        ref = reference_forward(state, action, params)

        assert out.shape == (batch, 1)
        # fusion of psi_l1/r_l1 only changes float associativity
        assert jnp.allclose(out, ref, atol=1e-4, rtol=1e-4), \
            float(jnp.max(jnp.abs(out - ref)))

    print("KERNEL_OK")
</pallas_src>

<mosaic_0001>
module attributes {stable_mosaic.version = 11 : i64} {
  func.func @kernel(%arg0: i32, %arg1: memref<8x12xf32, #tpu.memory_space<vmem>>, %arg2: memref<8x4xf32, #tpu.memory_space<vmem>>, %arg3: memref<88x32xf32, #tpu.memory_space<vmem>>, %arg4: memref<1x8xf32, #tpu.memory_space<vmem>>) attributes {dimension_semantics = [#tpu.dimension_semantics<parallel>], iteration_bounds = array<i64: 1>, scalar_prefetch = 0 : i64, scratch_operands = 0 : i64, tpu.core_type = #tpu.core_type<tc>, window_params = [{transform_indices = @transform_0, window_bounds = array<i64: 8, 12>}, {transform_indices = @transform_1, window_bounds = array<i64: 8, 4>}, {pipeline_mode = #tpu.pipeline_mode<synchronous>, transform_indices = @transform_2, window_bounds = array<i64: 88, 32>}, {transform_indices = @transform_3, window_bounds = array<i64: 1, 8>}]} {
    %c0 = arith.constant 0 : index
    %c0_0 = arith.constant 0 : index
    %0 = vector.load %arg3[%c0, %c0_0] : memref<88x32xf32, #tpu.memory_space<vmem>>, vector<12x32xf32>
    %c16 = arith.constant 16 : index
    %c0_1 = arith.constant 0 : index
    %1 = vector.load %arg3[%c16, %c0_1] : memref<88x32xf32, #tpu.memory_space<vmem>>, vector<4x32xf32>
    %c24 = arith.constant 24 : index
    %c0_2 = arith.constant 0 : index
    %2 = vector.load %arg3[%c24, %c0_2] : memref<88x32xf32, #tpu.memory_space<vmem>>, vector<32x32xf32>
    %c56 = arith.constant 56 : index
    %c0_3 = arith.constant 0 : index
    %3 = vector.load %arg3[%c56, %c0_3] : memref<88x32xf32, #tpu.memory_space<vmem>>, vector<1x32xf32>
    %c64 = arith.constant 64 : index
    %c0_4 = arith.constant 0 : index
    %4 = vector.load %arg3[%c64, %c0_4] : memref<88x32xf32, #tpu.memory_space<vmem>>, vector<1x32xf32>
    %c72 = arith.constant 72 : index
    %c0_5 = arith.constant 0 : index
    %5 = vector.load %arg3[%c72, %c0_5] : memref<88x32xf32, #tpu.memory_space<vmem>>, vector<1x32xf32>
    %c80 = arith.constant 80 : index
    %c0_6 = arith.constant 0 : index
    %6 = vector.load %arg3[%c80, %c0_6] : memref<88x32xf32, #tpu.memory_space<vmem>>, vector<1x1xf32>
    %c0_7 = arith.constant 0 : index
    %c0_8 = arith.constant 0 : index
    %7 = vector.load %arg1[%c0_7, %c0_8] : memref<8x12xf32, #tpu.memory_space<vmem>>, vector<8x12xf32>
    %cst = arith.constant dense<0.000000e+00> : vector<8x32xf32>
    %8 = tpu.matmul %7, %0, %cst {dimension_numbers = #tpu.dot_dimension_numbers<[1], [0], [0], [1], [0, 0, 1, 1], [], []>} : vector<8x12xf32>, vector<12x32xf32>, vector<8x32xf32> -> vector<8x32xf32>
    %c0_9 = arith.constant 0 : index
    %c0_10 = arith.constant 0 : index
    %9 = vector.load %arg2[%c0_9, %c0_10] : memref<8x4xf32, #tpu.memory_space<vmem>>, vector<8x4xf32>
    %cst_11 = arith.constant dense<0.000000e+00> : vector<8x32xf32>
    %10 = tpu.matmul %9, %1, %cst_11 {dimension_numbers = #tpu.dot_dimension_numbers<[1], [0], [0], [1], [0, 0, 1, 1], [], []>} : vector<8x4xf32>, vector<4x32xf32>, vector<8x32xf32> -> vector<8x32xf32>
    %11 = arith.addf %8, %10 : vector<8x32xf32>
    %12 = vector.broadcast %4 : vector<1x32xf32> to vector<8x32xf32>
    %13 = arith.addf %11, %12 : vector<8x32xf32>
    %cst_12 = arith.constant 0.000000e+00 : f32
    %14 = vector.broadcast %cst_12 : f32 to vector<8x32xf32>
    %15 = arith.maximumf %13, %14 : vector<8x32xf32>
    %cst_13 = arith.constant dense<0.000000e+00> : vector<8x32xf32>
    %16 = tpu.matmul %15, %2, %cst_13 {dimension_numbers = #tpu.dot_dimension_numbers<[1], [0], [0], [1], [0, 0, 1, 1], [], []>} : vector<8x32xf32>, vector<32x32xf32>, vector<8x32xf32> -> vector<8x32xf32>
    %17 = vector.broadcast %5 : vector<1x32xf32> to vector<8x32xf32>
    %18 = arith.addf %16, %17 : vector<8x32xf32>
    %cst_14 = arith.constant 0.000000e+00 : f32
    %19 = vector.broadcast %cst_14 : f32 to vector<8x32xf32>
    %20 = arith.maximumf %18, %19 : vector<8x32xf32>
    %cst_15 = arith.constant dense<0.000000e+00> : vector<1x8xf32>
    %21 = tpu.matmul %3, %20, %cst_15 {dimension_numbers = #tpu.dot_dimension_numbers<[1], [1], [0], [0], [0, 0, 1, 0], [], []>} : vector<1x32xf32>, vector<8x32xf32>, vector<1x8xf32> -> vector<1x8xf32>
    %22 = vector.broadcast %6 : vector<1x1xf32> to vector<1x8xf32>
    %23 = arith.addf %21, %22 : vector<1x8xf32>
    %c0_16 = arith.constant 0 : index
    %c0_17 = arith.constant 0 : index
    %24 = vector.load %arg4[%c0_16, %c0_17] : memref<1x8xf32, #tpu.memory_space<vmem>>, vector<1x8xf32>
    tpu.vector_store %arg4[%c0_16, %c0_17], %23 {strides = array<i32>} : memref<1x8xf32, #tpu.memory_space<vmem>>, vector<1x8xf32>,
    return
  }
  func.func @transform_0(%arg0: i32) -> (i32, i32) {
    %c0_i32 = arith.constant 0 : i32
    %c0_i32_0 = arith.constant 0 : i32
    return %arg0, %c0_i32 : i32, i32
  }
  func.func @transform_1(%arg0: i32) -> (i32, i32) {
    %c0_i32 = arith.constant 0 : i32
    %c0_i32_0 = arith.constant 0 : i32
    return %arg0, %c0_i32 : i32, i32
  }
  func.func @transform_2(%arg0: i32) -> (i32, i32) {
    %c0_i32 = arith.constant 0 : i32
    %c0_i32_0 = arith.constant 0 : i32
    %c0_i32_1 = arith.constant 0 : i32
    return %c0_i32, %c0_i32_0 : i32, i32
  }
  func.func @transform_3(%arg0: i32) -> (i32, i32) {
    %c0_i32 = arith.constant 0 : i32
    %c0_i32_0 = arith.constant 0 : i32
    return %c0_i32, %arg0 : i32, i32
  }
}

</mosaic_0001>

<bundles_post_ra>
// kernel: tpu_custom_call.1
= control target key start
LH: loop header
LB: loop body
LE: loop exit
PB: predicated region body
PF: predicated region fallthrough
CT: control target
= control target key end

     0   :  { %vm32_vm0 = vcmask 1043456   ;;  %v455_v2 = vmov 0.0|0.0   ;;  %v456_v3 = vmov 0.0   ;;  %vm28_vm1 = vcmask 31744   ;;  %s532_s0 = inlined_call_operand.vmem [shape: f32[8,12], index: 0, kind: input, shape index: {}]   ;;  %s533_s1 = inlined_call_operand.vmem [shape: f32[8,4], index: 1, kind: input, shape index: {}]   ;;  %s534_s2 = inlined_call_operand.vmem [shape: f32[88,32], index: 2, kind: input, shape index: {}]   ;;  %s535_s3 = inlined_call_operand.hbm [shape: f32[1,8], index: 3, kind: output, shape index: {}]  }
   0x1   :  { %v15_v0 = vld [vmem:[%s534_s2] sm:$0xff]  ;;  %v16_v1 = vld [vmem:[%s534_s2 + $0x8] sm:$0xf]  ;;  %414 = vmatprep.subr.bf16.mxu1 %v455_v2  ;;  %386 = vmatprep.subr.mxu0 %v456_v3  ;;  %v17_v5 = vld [vmem:[%s534_s2 + $0x10] sm:$0xf]  ;;  %vm457_vm2 = vmmov 1  }
   0x2   :  { %v415_v4 = vpack.c.bf16 %v16_v1, %v15_v0  ;;  %v27_v6 = vld [vmem:[%s533_s1] sm:$0xff]  ;;  %vm416_vm3 = vmpackc.low %vm32_vm0, %vm457_vm2  ;;  %387 = vmatpush3.msk.msra.mxu0 %vm32_vm0, %v17_v5  ;;  %vm458_vm4 = vmmov 0   ;;  %vm106_vm5 = vcmask 97280  }
   0x3   :  { %388 = vmatprep.mubr.msk.f32.mxu0 %vm458_vm4, %v456_v3  ;;  %v26_v7 = vld [vmem:[%s532_s0] sm:$0xff] }
   0x4   :  { %417 = vmatpush3.bf16.msk.msra.mxu1 %vm416_vm3, %v415_v4  ;;  %389 = vmatmul.mubr.msk.f32.vlgmr.msra.gmra.mrb[0].mxu0 %vm28_vm1, %v27_v6 }
   0x5   :  { %8 = vsyncpa [#allocation3], 0  ;;  %395 = vmatprep.mubr.msk.f32.mxu1 %vm458_vm4, %v456_v3  ;;  %418 = vmatprep.subr.bf16.mxu0 %v455_v2  ;;  %v18_v8 = vld [vmem:[%s534_s2 + $0x18] sm:$0xff]  ;;  %v19_v9 = vld [vmem:[%s534_s2 + $0x20] sm:$0xff]  ;;  %vm193_vm6 = vcmask 261120   ;;  %v459_v23 = vmov 0  }
   0x6   :  { %406 = vmatprep.mubr.msk.f32.mxu0 %vm458_vm4, %v456_v3  ;;  %409 = vmatprep.subr.mxu1 %v456_v3  ;;  %v419_v10 = vpack.c.bf16 %v19_v9, %v18_v8  ;;  %v20_v11 = vld [vmem:[%s534_s2 + $0x28] sm:$0xff]  ;;  %v21_v12 = vld [vmem:[%s534_s2 + $0x30] sm:$0xff]  ;;  %v369_v16 = vld [vmem:[%s534_s2 + $0x40] ss:$0 sm:$0xff]  ;;  %s460_s9 = smov [#allocation2]   ;;  %vm349_vm7 = vcmask 57344  }
   0x7   :  { %396 = vmatmul.mubr.msk.f32.vlgmr.msra.gmra.mrb[0].mxu1 %vm106_vm5, %v26_v7  ;;  %v422_v13 = vpack.c.bf16 %v21_v12, %v20_v11  ;;  %v25_v22 = vld [vmem:[%s534_s2 + $0x50] sm:$0x1]  ;;  %430 = vset.pattern.permute.xlu0 %v459_v23  ;;  %v370_v24 = vld [vmem:[%s534_s2 + $0x48] ss:$0 sm:$0xff]  ;;  %v22_v29 = vld [vmem:[%s534_s2 + $0x38] sm:$0x1] }
   0x8   :  { %411 = vmatprep.mubr.msk.f32.mxu1 %vm458_vm4, %v456_v3  ;;  %420 = vmatpush3.bf16.msra.mxu0 %v419_v10  ;;  %s357_s10 = sshll.u32 %s460_s9, 4  ;;  %s358_s10 = int_to_ptr.vmem [resolvable:$true] %s357_s10 }
   0x9   :  { %421 = vmatprep.subr.bf16.mxu0 %v455_v2  ;;  %270 = vperm.xlu0 %430, %v25_v22   ;;  %s431_s11 = scalar_lea.vmem %s358_s10, 16  ;;  %s435_s12 = scalar_lea.vmem %s358_s10, 32 }
   0xa   :  { %p432_p0 = scmp.ne.s32.totalorder %s358_s10, %s431_s11  ;;  %p436_p1 = scmp.lt.s32.totalorder %s358_s10, %s358_s10 }
   0xb   :  { %p437_p2 = scmp.lt.s32.totalorder %s435_s12, %s431_s11 }
   0xc   :  { %423 = vmatpush3.bf16.msra.mxu0 %v422_v13 }
   0xd   :  { %p438_p3 = por %p437_p2, %p436_p1 }
   0xf   :  { %p439_p4 = pnand %p438_p3, %p432_p0 }
  0x88   :  { %v271_v30 = vpop.permute.xlu0 %270 }
  0xd7   :  { %v102_v14 = vpop.f32.mrb[0].mxu0 }
  0xd8   :  { %v390_v15 = vpop.f32.mrb[1].mxu0 }
  0xda   :  { %v179_v17 = vpop.f32.mrb[0].mxu1 }
  0xdb   :  { %v180_v18 = vadd.f32 %v179_v17, %v102_v14  ;;  %v397_v19 = vpop.f32.mrb[1].mxu1 }
  0xdd   :  { %v187_v20 = vadd.f32 %v369_v16, %v180_v18 }
  0xdf   :  { %v188_v21 = vmax.f32 %v187_v20, 0.0 }
  0xe1   :  { %407 = vmatmul.mubr.msk.f32.vlgmr.msra.gmra.mrb[2].mxu0 %vm193_vm6, %v188_v21 }
 0x1b4   :  { %v263_v25 = vpop.f32.mrb[2].mxu0 }
 0x1b5   :  { %v264_v26 = vadd.f32 %v370_v24, %v263_v25  ;;  %v408_v27 = vpop.f32.mrb[3].mxu0 }
 0x1b7   :  { %v267_v28 = vmax.f32 %v264_v26, 0.0 }
 0x1b9   :  { %410 = vmatpush3.xpose.msk.msra.mxu1 %vm193_vm6, %v267_v28 }
 0x1bc   :  { %412 = vmatmul.mubr.msk.f32.vlgmr.msra.gmra.mrb[2].mxu1 %vm193_vm6, %v22_v29 }
 0x28f   :  { %v345_v31 = vpop.f32.mrb[2].mxu1 }
 0x290   :  { %v346_v32 = vadd.f32 %v345_v31, %v271_v30  ;;  %v413_v33 = vpop.f32.mrb[3].mxu1 }
 0x292   :  { %350 = vst.msk [vmem:[#allocation2] sm:$0x1] %vm349_vm7, %v346_v32 }
 0x293   :  { %442 = shalt.err (!%p439_p4)
}
 0x294   :  { %s443_s14 = scalar_lea.hbm %s535_s3, 16 }
 0x295   :  { %p444_p5 = scmp.ne.s32.totalorder %s535_s3, %s443_s14  ;;  %p447_p6 = scmp.lt.u32.totalorder %s443_s14, %s535_s3 }
 0x297   :  { %p449_p7 = pnand %p447_p6, %p444_p5 }
 0x299   :  { %452 = shalt.err (!%p449_p7)
}
 0x29a   :  { %360 = dma.vmem_to_hbm [thread:$0]  %s358_s10, 16, %s535_s3, [#allocation3]  }
 0x29b   :  { %453 = dma.done.wait [#allocation3], 16  }
 0x29c   :  { %454 = vsyncadd [#allocation3], 4294967280 }
 0x29d   :  { %364 = vsyncpa [#allocation3], 1 }

</bundles_post_ra>
